<compile_context>
chip_gen: v6e
topology: v6e:2x2x1
jax: 0.10.0
libtpu: 0.0.40
codegen_flags: <defaults>
</compile_context>

<pallas_src>
import functools

import jax
import jax.numpy as jnp
import numpy as np
from jax.experimental import pallas as pl
from jax.experimental.pallas import tpu as pltpu


LANE = 128  # TPU lane width; conv spatial dim is padded up to a multiple of this


# ------------------------------ fused kernel -------------------------------

def _fused_kernel(pt_ref, wc_ref, bc_ref, w1_ref, b1_ref, w2_ref, b2_ref,
                  o_ref, *, cout):
    """One batch element per grid step; all intermediates stay in VMEM/vregs.

    pt_ref : [1, K, Pp]     im2col patches, transposed (K x spatial), zero-padded
    wc_ref : [Cout, K]      conv weight, flattened
    bc_ref : [Cout, 1]      conv bias (column)
    w1_ref : [Cout*Pp, H1]  fc1 weight with flatten permutation + padding folded in
    b1_ref : [1, H1]
    w2_ref : [H1, A]
    b2_ref : [1, A]
    o_ref  : [1, 1, A]
    """
    pt = pt_ref[0]                                                    # [K, Pp]

    # conv as a single matmul with a lane-dense [Cout, Pp] output, + bias + ReLU
    h = jnp.dot(wc_ref[...], pt, preferred_element_type=jnp.float32)
    h = jnp.maximum(h + bc_ref[...], 0.0)                             # [Cout, Pp]

    # "flatten": each row of h is a full multiple-of-128-lane slab, so the
    # concat just places vregs side by side.  The NCHW permutation and the
    # zero-padding of the spatial dim are already baked into w1_ref.
    flat = jnp.concatenate([h[c:c + 1, :] for c in range(cout)], axis=1)  # [1, Cout*Pp]

    # fc1 + ReLU
    y1 = jnp.dot(flat, w1_ref[...], preferred_element_type=jnp.float32) + b1_ref[...]
    y1 = jnp.maximum(y1, 0.0)                                         # [1, H1]

    # fc2
    y2 = jnp.dot(y1, w2_ref[...], preferred_element_type=jnp.float32) + b2_ref[...]
    o_ref[0] = y2                                                     # [1, A]


# ------------------------------- glue (JAX) --------------------------------

def _im2col_T(x, kh, kw, stride, oh, ow, pp):
    """x: [B, Cin, H, W] -> transposed patches [B, Cin*kh*kw, pp] (zero-padded)."""
    B, Cin, H, W = x.shape
    cols = []
    for i in range(kh):
        rows = []
        for j in range(kw):
            rows.append(x[:, :, i:i + stride * oh:stride, j:j + stride * ow:stride])
        cols.append(jnp.stack(rows, axis=2))            # [B, Cin, kw, oh, ow]
    pt = jnp.stack(cols, axis=2)                        # [B, Cin, kh, kw, oh, ow]
    pt = pt.reshape(B, Cin * kh * kw, oh * ow)          # k = cin*kh*kw-major order
    return jnp.pad(pt, ((0, 0), (0, 0), (0, pp - oh * ow)))


def prepare_params(params):
    """One-time reshape/pad of the PyTorch-layout parameters (not per forward)."""
    Wc, bc, W1, b1, W2, b2 = params
    Cout, Cin, KH, KW = Wc.shape
    hidden = W1.shape[0]
    assert W1.shape[1] % Cout == 0
    P = W1.shape[1] // Cout                      # = OH * OW
    Pp = ((P + LANE - 1) // LANE) * LANE         # pad spatial dim to lane width

    wcT = Wc.reshape(Cout, Cin * KH * KW).astype(jnp.float32)      # [Cout, K]
    bc_col = bc.reshape(Cout, 1).astype(jnp.float32)               # [Cout, 1]

    # Fold NCHW flatten order (c*P + p) and spatial padding into the fc1 weight.
    w1r = W1.reshape(hidden, Cout, P).transpose(1, 2, 0)           # [Cout, P, hidden]
    w1r = jnp.pad(w1r, ((0, 0), (0, Pp - P), (0, 0)))              # [Cout, Pp, hidden]
    w1pad = w1r.reshape(Cout * Pp, hidden).astype(jnp.float32)     # [Cout*Pp, hidden]
    b1_row = b1.reshape(1, hidden).astype(jnp.float32)

    w2T = W2.T.astype(jnp.float32)                                 # [hidden, A]
    b2_row = b2.reshape(1, W2.shape[0]).astype(jnp.float32)
    return (wcT, bc_col, w1pad, b1_row, w2T, b2_row)


@functools.partial(jax.jit, static_argnames=("kh", "kw", "stride"))
def basic_network_forward(x, prepped, *, kh, kw, stride):
    """Pallas implementation of BasicNetwork.forward (x is NCHW, like PyTorch)."""
    # NOTE: the PyTorch module asserts x.data.max() <= 1.0 at runtime; that is a
    # data-dependent check we cannot express on traced values.
    wcT, bc_col, w1pad, b1_row, w2T, b2_row = prepped
    B, Cin, H, W = x.shape
    Cout, K = wcT.shape
    hidden, nact = w2T.shape
    Pp = w1pad.shape[0] // Cout
    OH = (H - kh) // stride + 1
    OW = (W - kw) // stride + 1
    assert K == Cin * kh * kw

    pt = _im2col_T(x, kh, kw, stride, OH, OW, Pp)        # [B, K, Pp]

    out3 = pl.pallas_call(
        functools.partial(_fused_kernel, cout=Cout),
        out_shape=jax.ShapeDtypeStruct((B, 1, nact), jnp.float32),
        grid=(B,),
        in_specs=[
            pl.BlockSpec((1, K, Pp), lambda b: (b, 0, 0)),      # patches (per batch)
            pl.BlockSpec((Cout, K), lambda b: (0, 0)),          # conv weight
            pl.BlockSpec((Cout, 1), lambda b: (0, 0)),          # conv bias
            pl.BlockSpec((Cout * Pp, hidden), lambda b: (0, 0)),  # fc1 weight (folded)
            pl.BlockSpec((1, hidden), lambda b: (0, 0)),        # fc1 bias
            pl.BlockSpec((hidden, nact), lambda b: (0, 0)),     # fc2 weight
            pl.BlockSpec((1, nact), lambda b: (0, 0)),          # fc2 bias
        ],
        out_specs=pl.BlockSpec((1, 1, nact), lambda b: (b, 0, 0)),
        compiler_params=pltpu.CompilerParams(
            dimension_semantics=("parallel",),        # megacore sharding on v7x
            vmem_limit_bytes=64 * 1024 * 1024,        # safeguard if shapes scale
        ),
    )(pt, wcT, bc_col, w1pad, b1_row, w2T, b2_row)
    return out3.reshape(B, nact)


# --------------------------- pure-JAX reference -----------------------------

def reference_forward(x, params, stride):
    Wc, bc, W1, b1, W2, b2 = params
    y = jax.lax.conv_general_dilated(
        x, Wc, window_strides=(stride, stride), padding="VALID",
        dimension_numbers=("NCHW", "OIHW", "NCHW"))
    y = jnp.maximum(y + bc[None, :, None, None], 0.0)
    y = y.reshape(x.shape[0], -1)
    y = jnp.maximum(y @ W1.T + b1, 0.0)
    y = y @ W2.T + b2
    return y


# ---------------------------------- main ------------------------------------

def _init_linear_like(key, out_f, in_f):
    kw_, kb_ = jax.random.split(key)
    bound = 1.0 / np.sqrt(in_f)
    W = jax.random.uniform(kw_, (out_f, in_f), jnp.float32, -bound, bound)
    b = jax.random.uniform(kb_, (out_f,), jnp.float32, -bound, bound)
    return W, b


if __name__ == "__main__":
    key = jax.random.PRNGKey(0)
    kx, kc, k1, k2 = jax.random.split(key, 4)

    # small shapes consistent with the DQN-style BasicNetwork
    B, Cin, H, W = 2, 4, 16, 16
    Cout, KH, KW, stride = 8, 4, 4, 2
    OH = (H - KH) // stride + 1
    OW = (W - KW) // stride + 1
    hidden, n_actions = 32, 6
    feat = Cout * OH * OW

    # input satisfies the module's `x.max() <= 1.0` assertion
    x = jax.random.uniform(kx, (B, Cin, H, W), jnp.float32, 0.0, 1.0)

    # deterministic parameter init (PyTorch-default-style uniform)
    kcw, kcb = jax.random.split(kc)
    bound_c = 1.0 / np.sqrt(Cin * KH * KW)
    Wc = jax.random.uniform(kcw, (Cout, Cin, KH, KW), jnp.float32, -bound_c, bound_c)
    bc = jax.random.uniform(kcb, (Cout,), jnp.float32, -bound_c, bound_c)
    W1, b1 = _init_linear_like(k1, hidden, feat)
    W2, b2 = _init_linear_like(k2, n_actions, hidden)
    params = (Wc, bc, W1, b1, W2, b2)

    prepped = prepare_params(params)                      # one-time weight prep
    out = basic_network_forward(x, prepped, kh=KH, kw=KW, stride=stride)
    out = jax.block_until_ready(out)

    ref = jax.block_until_ready(reference_forward(x, params, stride))
    np.testing.assert_allclose(np.asarray(out), np.asarray(ref), rtol=1e-3, atol=1e-3)
    assert out.shape == (B, n_actions)

    print("KERNEL_OK")
</pallas_src>

<mosaic_0001>
module attributes {stable_mosaic.version = 11 : i64} {
  func.func @_fused_kernel(%arg0: i32, %arg1: memref<1x64x128xf32, #tpu.memory_space<vmem>>, %arg2: memref<8x64xf32, #tpu.memory_space<vmem>>, %arg3: memref<8x1xf32, #tpu.memory_space<vmem>>, %arg4: memref<1024x32xf32, #tpu.memory_space<vmem>>, %arg5: memref<1x32xf32, #tpu.memory_space<vmem>>, %arg6: memref<32x6xf32, #tpu.memory_space<vmem>>, %arg7: memref<1x6xf32, #tpu.memory_space<vmem>>, %arg8: memref<1x1x6xf32, #tpu.memory_space<vmem>>) attributes {dimension_semantics = [#tpu.dimension_semantics<parallel>], iteration_bounds = array<i64: 2>, scalar_prefetch = 0 : i64, scratch_operands = 0 : i64, tpu.core_type = #tpu.core_type<tc>, window_params = [{transform_indices = @transform_0, window_bounds = array<i64: 1, 64, 128>}, {pipeline_mode = #tpu.pipeline_mode<synchronous>, transform_indices = @transform_1, window_bounds = array<i64: 8, 64>}, {pipeline_mode = #tpu.pipeline_mode<synchronous>, transform_indices = @transform_2, window_bounds = array<i64: 8, 1>}, {pipeline_mode = #tpu.pipeline_mode<synchronous>, transform_indices = @transform_3, window_bounds = array<i64: 1024, 32>}, {pipeline_mode = #tpu.pipeline_mode<synchronous>, transform_indices = @transform_4, window_bounds = array<i64: 1, 32>}, {pipeline_mode = #tpu.pipeline_mode<synchronous>, transform_indices = @transform_5, window_bounds = array<i64: 32, 6>}, {pipeline_mode = #tpu.pipeline_mode<synchronous>, transform_indices = @transform_6, window_bounds = array<i64: 1, 6>}, {transform_indices = @transform_7, window_bounds = array<i64: 1, 1, 6>}]} {
    %c0 = arith.constant 0 : index
    %c0_0 = arith.constant 0 : index
    %c0_1 = arith.constant 0 : index
    %0 = vector.load %arg1[%c0, %c0_0, %c0_1] : memref<1x64x128xf32, #tpu.memory_space<vmem>>, vector<1x64x128xf32>
    %1 = vector.shape_cast %0 : vector<1x64x128xf32> to vector<64x128xf32>
    %c0_2 = arith.constant 0 : index
    %c0_3 = arith.constant 0 : index
    %2 = vector.load %arg2[%c0_2, %c0_3] : memref<8x64xf32, #tpu.memory_space<vmem>>, vector<8x64xf32>
    %cst = arith.constant dense<0.000000e+00> : vector<8x128xf32>
    %3 = tpu.matmul %2, %1, %cst {dimension_numbers = #tpu.dot_dimension_numbers<[1], [0], [0], [1], [0, 0, 1, 1], [], []>} : vector<8x64xf32>, vector<64x128xf32>, vector<8x128xf32> -> vector<8x128xf32>
    %c0_4 = arith.constant 0 : index
    %c0_5 = arith.constant 0 : index
    %4 = vector.load %arg3[%c0_4, %c0_5] : memref<8x1xf32, #tpu.memory_space<vmem>>, vector<8x1xf32>
    %5 = vector.broadcast %4 : vector<8x1xf32> to vector<8x128xf32>
    %6 = arith.addf %3, %5 : vector<8x128xf32>
    %cst_6 = arith.constant 0.000000e+00 : f32
    %7 = vector.broadcast %cst_6 : f32 to vector<8x128xf32>
    %8 = arith.maximumf %6, %7 : vector<8x128xf32>
    %9 = vector.extract_strided_slice %8 {offsets = [0, 0], sizes = [1, 128], strides = [1, 1]} : vector<8x128xf32> to vector<1x128xf32>
    %10 = vector.extract_strided_slice %8 {offsets = [1, 0], sizes = [1, 128], strides = [1, 1]} : vector<8x128xf32> to vector<1x128xf32>
    %11 = vector.extract_strided_slice %8 {offsets = [2, 0], sizes = [1, 128], strides = [1, 1]} : vector<8x128xf32> to vector<1x128xf32>
    %12 = vector.extract_strided_slice %8 {offsets = [3, 0], sizes = [1, 128], strides = [1, 1]} : vector<8x128xf32> to vector<1x128xf32>
    %13 = vector.extract_strided_slice %8 {offsets = [4, 0], sizes = [1, 128], strides = [1, 1]} : vector<8x128xf32> to vector<1x128xf32>
    %14 = vector.extract_strided_slice %8 {offsets = [5, 0], sizes = [1, 128], strides = [1, 1]} : vector<8x128xf32> to vector<1x128xf32>
    %15 = vector.extract_strided_slice %8 {offsets = [6, 0], sizes = [1, 128], strides = [1, 1]} : vector<8x128xf32> to vector<1x128xf32>
    %16 = vector.extract_strided_slice %8 {offsets = [7, 0], sizes = [1, 128], strides = [1, 1]} : vector<8x128xf32> to vector<1x128xf32>
    %17 = tpu.concatenate %9, %10, %11, %12, %13, %14, %15, %16 in 1 : vector<1x128xf32>, vector<1x128xf32>, vector<1x128xf32>, vector<1x128xf32>, vector<1x128xf32>, vector<1x128xf32>, vector<1x128xf32>, vector<1x128xf32> -> vector<1x1024xf32>
    %c0_7 = arith.constant 0 : index
    %c0_8 = arith.constant 0 : index
    %18 = vector.load %arg4[%c0_7, %c0_8] : memref<1024x32xf32, #tpu.memory_space<vmem>>, vector<1024x32xf32>
    %cst_9 = arith.constant dense<0.000000e+00> : vector<1x32xf32>
    %19 = tpu.matmul %17, %18, %cst_9 {dimension_numbers = #tpu.dot_dimension_numbers<[1], [0], [0], [1], [0, 0, 1, 1], [], []>} : vector<1x1024xf32>, vector<1024x32xf32>, vector<1x32xf32> -> vector<1x32xf32>
    %c0_10 = arith.constant 0 : index
    %c0_11 = arith.constant 0 : index
    %20 = vector.load %arg5[%c0_10, %c0_11] : memref<1x32xf32, #tpu.memory_space<vmem>>, vector<1x32xf32>
    %21 = arith.addf %19, %20 : vector<1x32xf32>
    %cst_12 = arith.constant 0.000000e+00 : f32
    %22 = vector.broadcast %cst_12 : f32 to vector<1x32xf32>
    %23 = arith.maximumf %21, %22 : vector<1x32xf32>
    %c0_13 = arith.constant 0 : index
    %c0_14 = arith.constant 0 : index
    %24 = vector.load %arg6[%c0_13, %c0_14] : memref<32x6xf32, #tpu.memory_space<vmem>>, vector<32x6xf32>
    %cst_15 = arith.constant dense<0.000000e+00> : vector<1x6xf32>
    %25 = tpu.matmul %23, %24, %cst_15 {dimension_numbers = #tpu.dot_dimension_numbers<[1], [0], [0], [1], [0, 0, 1, 1], [], []>} : vector<1x32xf32>, vector<32x6xf32>, vector<1x6xf32> -> vector<1x6xf32>
    %c0_16 = arith.constant 0 : index
    %c0_17 = arith.constant 0 : index
    %26 = vector.load %arg7[%c0_16, %c0_17] : memref<1x6xf32, #tpu.memory_space<vmem>>, vector<1x6xf32>
    %27 = arith.addf %25, %26 : vector<1x6xf32>
    %c0_18 = arith.constant 0 : index
    %c0_19 = arith.constant 0 : index
    %c0_20 = arith.constant 0 : index
    %28 = vector.load %arg8[%c0_18, %c0_19, %c0_20] : memref<1x1x6xf32, #tpu.memory_space<vmem>>, vector<1x1x6xf32>
    %29 = vector.shape_cast %28 : vector<1x1x6xf32> to vector<1x6xf32>
    %30 = vector.shape_cast %27 : vector<1x6xf32> to vector<1x1x6xf32>
    tpu.vector_store %arg8[%c0_18, %c0_19, %c0_20], %30 {strides = array<i32>} : memref<1x1x6xf32, #tpu.memory_space<vmem>>, vector<1x1x6xf32>,
    return
  }
  func.func @transform_0(%arg0: i32) -> (i32, i32, i32) {
    %c0_i32 = arith.constant 0 : i32
    %c0_i32_0 = arith.constant 0 : i32
    %c0_i32_1 = arith.constant 0 : i32
    return %arg0, %c0_i32, %c0_i32_0 : i32, i32, i32
  }
  func.func @transform_1(%arg0: i32) -> (i32, i32) {
    %c0_i32 = arith.constant 0 : i32
    %c0_i32_0 = arith.constant 0 : i32
    %c0_i32_1 = arith.constant 0 : i32
    return %c0_i32, %c0_i32_0 : i32, i32
  }
  func.func @transform_2(%arg0: i32) -> (i32, i32) {
    %c0_i32 = arith.constant 0 : i32
    %c0_i32_0 = arith.constant 0 : i32
    %c0_i32_1 = arith.constant 0 : i32
    return %c0_i32, %c0_i32_0 : i32, i32
  }
  func.func @transform_3(%arg0: i32) -> (i32, i32) {
    %c0_i32 = arith.constant 0 : i32
    %c0_i32_0 = arith.constant 0 : i32
    %c0_i32_1 = arith.constant 0 : i32
    return %c0_i32, %c0_i32_0 : i32, i32
  }
  func.func @transform_4(%arg0: i32) -> (i32, i32) {
    %c0_i32 = arith.constant 0 : i32
    %c0_i32_0 = arith.constant 0 : i32
    %c0_i32_1 = arith.constant 0 : i32
    return %c0_i32, %c0_i32_0 : i32, i32
  }
  func.func @transform_5(%arg0: i32) -> (i32, i32) {
    %c0_i32 = arith.constant 0 : i32
    %c0_i32_0 = arith.constant 0 : i32
    %c0_i32_1 = arith.constant 0 : i32
    return %c0_i32, %c0_i32_0 : i32, i32
  }
  func.func @transform_6(%arg0: i32) -> (i32, i32) {
    %c0_i32 = arith.constant 0 : i32
    %c0_i32_0 = arith.constant 0 : i32
    %c0_i32_1 = arith.constant 0 : i32
    return %c0_i32, %c0_i32_0 : i32, i32
  }
  func.func @transform_7(%arg0: i32) -> (i32, i32, i32) {
    %c0_i32 = arith.constant 0 : i32
    %c0_i32_0 = arith.constant 0 : i32
    %c0_i32_1 = arith.constant 0 : i32
    return %arg0, %c0_i32, %c0_i32_0 : i32, i32, i32
  }
}

</mosaic_0001>

<bundles_post_ra>
// kernel: basic_network_forward.1
= control target key start
LH: loop header
LB: loop body
LE: loop exit
PB: predicated region body
PF: predicated region fallthrough
CT: control target
= control target key end

     0   :  { %12 = vsyncpa [#allocation3], 0  ;;  %s1822_s0 = inlined_call_operand.vmem [shape: f32[2,64,128], index: 0, kind: input, shape index: {}]   ;;  %s1823_s1 = inlined_call_operand.vmem [shape: f32[8,64], index: 1, kind: input, shape index: {}]   ;;  %s1824_s2 = inlined_call_operand.vmem [shape: f32[8,1], index: 2, kind: input, shape index: {}]   ;;  %s1825_s3 = inlined_call_operand.vmem [shape: f32[1024,32], index: 3, kind: input, shape index: {}]   ;;  %s1826_s4 = inlined_call_operand.vmem [shape: f32[1,32], index: 4, kind: input, shape index: {}]   ;;  %s1827_s5 = inlined_call_operand.vmem [shape: f32[32,6], index: 5, kind: input, shape index: {}]   ;;  %s1828_s6 = inlined_call_operand.vmem [shape: f32[1,6], index: 6, kind: input, shape index: {}]   ;;  %s1829_s7 = inlined_call_operand.hbm [shape: f32[2,1,6], index: 7, kind: output, shape index: {}]  }
   0x1   :  { %14 = vsyncpa [#allocation3 + $0x1], 0  ;;  %s1285_s24 = smov 0   ;;  %s1287_s25 = smov 0  }
   0x2   :  { %s1289_s26 = smov 0   ;;  %s1291_s27 = smov 0  }
   0x3 LB: > { %s1306_s28 = sadd.s32 4294967295, %s1239_s27   ;;  %s940_s29 = sadd.s32 4294967294, %s1239_s27   ;;  %s1239_s27 = sphi %s1291_s27, %s1835_s27   ;;  %s1235_s26 = sphi %s1289_s26, %s1834_s26   ;;  %s1231_s25 = sphi %s1287_s25, %s1833_s25   ;;  %s1227_s24 = sphi %s1285_s24, %s1832_s24  }
   0x4   : > { %s1310_s30 = sadd.s32 1, %s1239_s27   ;;  %s179_s8 = sadd.s32 1, %s1235_s26 }
   0x5   : > { %s176_s9 = ssub.s32 %s1239_s27, %s1310_s30  ;;  %p189_p0 = scmp.ne.s32.totalorder %s1235_s26, %s1231_s25 }
   0x6   : > { %p177_p1 = scmp.eq.s32.totalorder %s176_s9, 0  ;;  %p190_p2 = scmp.eq.s32.totalorder %s1306_s28, 1 }
   0x7   : > { %p195_p3 = scmp.ne.s32.totalorder %s1231_s25, %s1227_s24  ;;  %p196_p4 = scmp.eq.s32.totalorder %s940_s29, 1 }
   0x8   : > { %s1321_s10 = scalar_select %p177_p1, %s1235_s26, %s179_s8  }
   0x9   : > { %p1323_p5 = por %p190_p2, %p189_p0  ;;  %p1327_p6 = por %p196_p4, %p195_p3 }
   0xa   : > { %p943_p7 = scmp.ge.s32.totalorder %s1239_s27, 1  ;;  %p240_p8 = scmp.lt.s32.totalorder %s1239_s27, 3 }
   0xc   : > { %p241_p9 = pnand %p943_p7, %p240_p8 }
   0xd   : > { %p271_p10 = scmp.lt.s32.totalorder (!%p241_p9), %s1306_s28, 1  ;;  %s948_s9 = sshll.u32 (!%p241_p9), %s1306_s28, 4 }
   0xe   : > { %244 = sbr.rel (%p241_p9) target bundleno = 683 (0x2ab), region = 48 }
  0x13   : > { %v1241_v0 = vmov 0.0   ;;  %vm1242_vm0 = vmmov 0   ;;  %v285_v1 = vld [vmem:[%s1824_s2] sm:$0xff]  ;;  %v412_v2 = vld [vmem:[%s1825_s3 + $0xf8] sm:$0xff]  ;;  %s272_s17 = scalar_select %p271_p10, %s1306_s28, 1  ;;  %v1243_v3 = vmov 0  }
  0x14   : > { %1106 = vmatprep.subr.mxu0 %v1241_v0  ;;  %1122 = vmatprep.mubr.msk.f32.mxu0 %vm1242_vm0, %v1241_v0  ;;  %v396_v4 = vld [vmem:[%s1825_s3 + $0x78] sm:$0xff]  ;;  %v411_v5 = vld [vmem:[%s1825_s3 + $0xf0] sm:$0xff]  ;;  %v410_v7 = vld [vmem:[%s1825_s3 + $0xe8] sm:$0xff]  ;;  %vm291_vm1 = vcmask 523264   ;;  %vm796_vm2 = vcmask 261120   ;;  %vm870_vm3 = vcmask 40960  }
  0x15   : > { %1178 = vset.pattern.permute.xlu0 %v1243_v3  ;;  %961 = vmatprep.subr.mxu1 %v412_v2  ;;  %v395_v6 = vld [vmem:[%s1825_s3 + $0x70] sm:$0xff]  ;;  %s951_s29 = sshll.u32 %s272_s17, 6  ;;  %v394_v8 = vld [vmem:[%s1825_s3 + $0x68] sm:$0xff]  ;;  %v409_v9 = vld [vmem:[%s1825_s3 + $0xe0] sm:$0xff]  ;;  %s1787_s17 = scalar_lea.hbm %s1829_s7, %s948_s9 }
  0x16   : > { %288 = vperm.xlu0 %1178, %v285_v1   ;;  %962 = vmatpush3.msra.mxu1 %v396_v4  ;;  %s1362_s18 = scalar_lea.vmem %s1822_s0, %s951_s29  ;;  %v393_v13 = vld [vmem:[%s1825_s3 + $0x60] sm:$0xff]  ;;  %v408_v14 = vld [vmem:[%s1825_s3 + $0xd8] sm:$0xff]  ;;  %v407_v17 = vld [vmem:[%s1825_s3 + $0xd0] sm:$0xff]  ;;  %s269_s29 = sand.u32 1, %s1231_s25  }
  0x17   : > { %963 = vmatprep.subr.mxu1 %v411_v5  ;;  %v283_v10 = vld [vmem:[%s1362_s18 + $0x38] sm:$0xff]  ;;  %v282_v11 = vld [vmem:[%s1362_s18 + $0x30] sm:$0xff]  ;;  %v281_v12 = vld [vmem:[%s1362_s18 + $0x28] sm:$0xff]  ;;  %s270_s13 = scalar_lea.vmem [#allocation2], %s269_s29  ;;  %s873_s19 = scalar_lea.sflag [#allocation3], %s269_s29 }
  0x18   : > { %964 = vmatpush3.msra.mxu1 %v395_v6  ;;  %1107 = vmatpush3.msra.mxu0 %v283_v10  ;;  %v280_v15 = vld [vmem:[%s1362_s18 + $0x20] sm:$0xff]  ;;  %v392_v16 = vld [vmem:[%s1825_s3 + $0x58] sm:$0xff]  ;;  %v391_v18 = vld [vmem:[%s1825_s3 + $0x50] sm:$0xff]  ;;  %s885_s14 = sshll.u32 %s270_s13, 4  ;;  %s1244_s28 = smov [#allocation2]   ;;  %s886_s14 = int_to_ptr.vmem [resolvable:$true] %s885_s14 }
  0x19   : > { %965 = vmatprep.subr.mxu1 %v410_v7  ;;  %1108 = vmatprep.subr.mxu0 %v1241_v0  ;;  %v279_v19 = vld [vmem:[%s1362_s18 + $0x18] sm:$0xff]  ;;  %v406_v20 = vld [vmem:[%s1825_s3 + $0xc8] sm:$0xff]  ;;  %v405_v22 = vld [vmem:[%s1825_s3 + $0xc0] sm:$0xff]  ;;  %s1179_s20 = scalar_lea.vmem %s886_s14, 16  ;;  %s1183_s21 = sshll.u32 %s1244_s28, 4  ;;  %s1184_s21 = int_to_ptr.vmem [resolvable:$false] %s1183_s21 }
  0x1a   : > { %966 = vmatpush3.msra.mxu1 %v394_v8  ;;  %1109 = vmatpush3.msra.mxu0 %v282_v11  ;;  %v390_v21 = vld [vmem:[%s1825_s3 + $0x48] sm:$0xff]  ;;  %v278_v23 = vld [vmem:[%s1362_s18 + $0x10] sm:$0xff]  ;;  %v389_v24 = vld [vmem:[%s1825_s3 + $0x40] sm:$0xff]  ;;  %p1180_p11 = scmp.ne.s32.totalorder %s886_s14, %s1179_s20  ;;  %s1185_s22 = scalar_lea.vmem %s1184_s21, 32 }
  0x1b   : > { %967 = vmatprep.subr.mxu1 %v409_v9  ;;  %1110 = vmatprep.subr.mxu0 %v1241_v0  ;;  %v404_v25 = vld [vmem:[%s1825_s3 + $0xb8] sm:$0xff]  ;;  %v277_v26 = vld [vmem:[%s1362_s18 + $0x8] sm:$0xff]  ;;  %v403_v28 = vld [vmem:[%s1825_s3 + $0xb0] sm:$0xff]  ;;  %p1186_p0 = scmp.lt.s32.totalorder %s886_s14, %s1184_s21  ;;  %p1187_p1 = scmp.lt.s32.totalorder %s1185_s22, %s1179_s20 }
  0x1c   : > { %968 = vmatpush3.msra.mxu1 %v393_v13  ;;  %1111 = vmatpush3.msra.mxu0 %v281_v12  ;;  %v388_v27 = vld [vmem:[%s1825_s3 + $0x38] sm:$0xff]  ;;  %v276_v29 = vld [vmem:[%s1362_s18] sm:$0xff]  ;;  %v387_v30 = vld [vmem:[%s1825_s3 + $0x30] sm:$0xff]  ;;  %p1181_p12 = pnand %p1180_p11, %p1323_p5 }
  0x1d   : > { %969 = vmatprep.subr.mxu1 %v408_v14  ;;  %1112 = vmatprep.subr.mxu0 %v1241_v0  ;;  %v284_v31 = vld [vmem:[%s1823_s1] sm:$0xff]  ;;  %v444_v32 = vld [vmem:[%s1825_s3 + $0x1f8] sm:$0xff]  ;;  %v402_v34 = vld [vmem:[%s1825_s3 + $0xa8] sm:$0xff]  ;;  %p1188_p2 = por %p1187_p1, %p1186_p0 }
  0x1e   : > { %970 = vmatpush3.msra.mxu1 %v392_v16  ;;  %1113 = vmatpush3.msra.mxu0 %v280_v15  ;;  %v428_v33 = vld [vmem:[%s1825_s3 + $0x178] sm:$0xff]  ;;  %v443_v35 = vld [vmem:[%s1825_s3 + $0x1f0] sm:$0xff]  ;;  %v386_v36 = vld [vmem:[%s1825_s3 + $0x28] sm:$0xff]  ;;  %p1182_p13 = pneg %p1181_p12 }
  0x1f   : > { %971 = vmatprep.subr.mxu1 %v407_v17  ;;  %1114 = vmatprep.subr.mxu0 %v1241_v0  ;;  %v427_v37 = vld [vmem:[%s1825_s3 + $0x170] sm:$0xff]  ;;  %v401_v38 = vld [vmem:[%s1825_s3 + $0xa0] sm:$0xff]  ;;  %v442_v39 = vld [vmem:[%s1825_s3 + $0x1e8] sm:$0xff] }
  0x20   : > { %972 = vmatpush3.msra.mxu1 %v391_v18  ;;  %1115 = vmatpush3.msra.mxu0 %v279_v19  ;;  %v385_v40 = vld [vmem:[%s1825_s3 + $0x20] sm:$0xff]  ;;  %v426_v41 = vld [vmem:[%s1825_s3 + $0x168] sm:$0xff]  ;;  %v400_v42 = vld [vmem:[%s1825_s3 + $0x98] sm:$0xff]  ;;  %p1189_p3 = pnand %p1188_p2, %p1182_p13 }
  0x21   : > { %973 = vmatprep.subr.mxu1 %v406_v20  ;;  %1116 = vmatprep.subr.mxu0 %v1241_v0  ;;  %v441_v43 = vld [vmem:[%s1825_s3 + $0x1e0] sm:$0xff]  ;;  %v384_v44 = vld [vmem:[%s1825_s3 + $0x18] sm:$0xff]  ;;  %v439_v48 = vld [vmem:[%s1825_s3 + $0x1d0] sm:$0xff] }
  0x22   : > { %974 = vmatpush3.msra.mxu1 %v390_v21  ;;  %1117 = vmatpush3.msra.mxu0 %v278_v23  ;;  %v425_v45 = vld [vmem:[%s1825_s3 + $0x160] sm:$0xff]  ;;  %v440_v46 = vld [vmem:[%s1825_s3 + $0x1d8] sm:$0xff]  ;;  %v423_v49 = vld [vmem:[%s1825_s3 + $0x150] sm:$0xff] }
  0x23   : > { %975 = vmatprep.subr.mxu1 %v405_v22  ;;  %1118 = vmatprep.subr.mxu0 %v1241_v0  ;;  %v424_v47 = vld [vmem:[%s1825_s3 + $0x158] sm:$0xff]  ;;  %v438_v50 = vld [vmem:[%s1825_s3 + $0x1c8] sm:$0xff]  ;;  %v437_v52 = vld [vmem:[%s1825_s3 + $0x1c0] sm:$0xff] }
  0x24   : > { %976 = vmatpush3.msra.mxu1 %v389_v24  ;;  %1119 = vmatpush3.msra.mxu0 %v277_v26  ;;  %v422_v51 = vld [vmem:[%s1825_s3 + $0x148] sm:$0xff]  ;;  %v421_v53 = vld [vmem:[%s1825_s3 + $0x140] sm:$0xff]  ;;  %v436_v54 = vld [vmem:[%s1825_s3 + $0x1b8] sm:$0xff] }
  0x25   : > { %977 = vmatprep.subr.mxu1 %v404_v25  ;;  %1120 = vmatprep.subr.mxu0 %v1241_v0  ;;  %v420_v55 = vld [vmem:[%s1825_s3 + $0x138] sm:$0xff]  ;;  %v435_v56 = vld [vmem:[%s1825_s3 + $0x1b0] sm:$0xff]  ;;  %v434_v58 = vld [vmem:[%s1825_s3 + $0x1a8] sm:$0xff] }
  0x26   : > { %978 = vmatpush3.msra.mxu1 %v388_v27  ;;  %1121 = vmatpush3.msra.mxu0 %v276_v29  ;;  %v419_v57 = vld [vmem:[%s1825_s3 + $0x130] sm:$0xff]  ;;  %v418_v59 = vld [vmem:[%s1825_s3 + $0x128] sm:$0xff]  ;;  %v433_v60 = vld [vmem:[%s1825_s3 + $0x1a0] sm:$0xff] }
  0x27   : > { %979 = vmatprep.subr.mxu1 %v403_v28  ;;  %1123 = vmatmul.mubr.msk.f32.vlgmr.msra.gmra.mxu0 %vm291_vm1, %v284_v31  ;;  %v417_v61 = vld [vmem:[%s1825_s3 + $0x120] sm:$0xff]  ;;  %v432_v62 = vld [vmem:[%s1825_s3 + $0x198] sm:$0xff]  ;;  %v399_v1 = vld [vmem:[%s1825_s3 + $0x90] sm:$0xff] }
  0x28   : > { %980 = vmatpush3.msra.mxu1 %v387_v30  ;;  %996 = vmatprep.subr.mxu0 %v444_v32  ;;  %v416_v63 = vld [vmem:[%s1825_s3 + $0x118] sm:$0xff]  ;;  %v431_v2 = vld [vmem:[%s1825_s3 + $0x190] sm:$0xff]  ;;  %v398_v5 = vld [vmem:[%s1825_s3 + $0x88] sm:$0xff] }
  0x29   : > { %997 = vmatpush3.msra.mxu0 %v428_v33  ;;  %981 = vmatprep.subr.mxu1 %v402_v34  ;;  %v383_v3 = vld [vmem:[%s1825_s3 + $0x10] sm:$0xff]  ;;  %v430_v6 = vld [vmem:[%s1825_s3 + $0x188] sm:$0xff]  ;;  %v397_v9 = vld [vmem:[%s1825_s3 + $0x80] sm:$0xff] }
  0x2a   : > { %998 = vmatprep.subr.mxu0 %v443_v35  ;;  %982 = vmatpush3.msra.mxu1 %v386_v36  ;;  %v415_v4 = vld [vmem:[%s1825_s3 + $0x110] sm:$0xff]  ;;  %v382_v7 = vld [vmem:[%s1825_s3 + $0x8] sm:$0xff]  ;;  %v429_v10 = vld [vmem:[%s1825_s3 + $0x180] sm:$0xff] }
  0x2b   : > { %999 = vmatpush3.msra.mxu0 %v427_v37  ;;  %983 = vmatprep.subr.mxu1 %v401_v38  ;;  %v414_v8 = vld [vmem:[%s1825_s3 + $0x108] sm:$0xff]  ;;  %v381_v11 = vld [vmem:[%s1825_s3] sm:$0xff]  ;;  %v476_v13 = vld [vmem:[%s1825_s3 + $0x2f8] sm:$0xff] }
  0x2c   : > { %1000 = vmatprep.subr.mxu0 %v442_v39  ;;  %984 = vmatpush3.msra.mxu1 %v385_v40  ;;  %v413_v12 = vld [vmem:[%s1825_s3 + $0x100] sm:$0xff]  ;;  %v508_v14 = vld [vmem:[%s1825_s3 + $0x3f8] sm:$0xff]  ;;  %v475_v25 = vld [vmem:[%s1825_s3 + $0x2f0] sm:$0xff] }
  0x2d   : > { %1001 = vmatpush3.msra.mxu0 %v426_v41  ;;  %985 = vmatprep.subr.mxu1 %v400_v42  ;;  %v460_v23 = vld [vmem:[%s1825_s3 + $0x278] sm:$0xff]  ;;  %v507_v27 = vld [vmem:[%s1825_s3 + $0x3f0] sm:$0xff]  ;;  %v474_v31 = vld [vmem:[%s1825_s3 + $0x2e8] sm:$0xff] }
  0x2e   : > { %1002 = vmatprep.subr.mxu0 %v441_v43  ;;  %986 = vmatpush3.msra.mxu1 %v384_v44  ;;  %v492_v24 = vld [vmem:[%s1825_s3 + $0x378] sm:$0xff]  ;;  %v459_v29 = vld [vmem:[%s1825_s3 + $0x270] sm:$0xff]  ;;  %v506_v32 = vld [vmem:[%s1825_s3 + $0x3e8] sm:$0xff] }
  0x2f   : > { %1003 = vmatpush3.msra.mxu0 %v425_v45  ;;  %987 = vmatprep.subr.mxu1 %v399_v1  ;;  %v491_v30 = vld [vmem:[%s1825_s3 + $0x370] sm:$0xff]  ;;  %v458_v33 = vld [vmem:[%s1825_s3 + $0x268] sm:$0xff]  ;;  %v473_v35 = vld [vmem:[%s1825_s3 + $0x2e0] sm:$0xff] }
  0x30   : > { %1004 = vmatprep.subr.mxu0 %v440_v46  ;;  %988 = vmatpush3.msra.mxu1 %v383_v3  ;;  %v490_v34 = vld [vmem:[%s1825_s3 + $0x368] sm:$0xff]  ;;  %v505_v36 = vld [vmem:[%s1825_s3 + $0x3e0] sm:$0xff]  ;;  %v472_v39 = vld [vmem:[%s1825_s3 + $0x2d8] sm:$0xff] }
  0x31   : > { %1005 = vmatpush3.msra.mxu0 %v424_v47  ;;  %989 = vmatprep.subr.mxu1 %v398_v5  ;;  %v457_v37 = vld [vmem:[%s1825_s3 + $0x260] sm:$0xff]  ;;  %v504_v40 = vld [vmem:[%s1825_s3 + $0x3d8] sm:$0xff]  ;;  %v471_v43 = vld [vmem:[%s1825_s3 + $0x2d0] sm:$0xff] }
  0x32   : > { %1006 = vmatprep.subr.mxu0 %v439_v48  ;;  %990 = vmatpush3.msra.mxu1 %v382_v7  ;;  %v489_v38 = vld [vmem:[%s1825_s3 + $0x360] sm:$0xff]  ;;  %v456_v41 = vld [vmem:[%s1825_s3 + $0x258] sm:$0xff]  ;;  %v503_v44 = vld [vmem:[%s1825_s3 + $0x3d0] sm:$0xff] }
  0x33   : > { %1007 = vmatpush3.msra.mxu0 %v423_v49  ;;  %991 = vmatprep.subr.mxu1 %v397_v9  ;;  %v488_v42 = vld [vmem:[%s1825_s3 + $0x358] sm:$0xff]  ;;  %v455_v45 = vld [vmem:[%s1825_s3 + $0x250] sm:$0xff]  ;;  %v470_v47 = vld [vmem:[%s1825_s3 + $0x2c8] sm:$0xff] }
  0x34   : > { %1008 = vmatprep.subr.mxu0 %v438_v50  ;;  %992 = vmatpush3.msra.mxu1 %v381_v11  ;;  %v487_v46 = vld [vmem:[%s1825_s3 + $0x350] sm:$0xff]  ;;  %v502_v48 = vld [vmem:[%s1825_s3 + $0x3c8] sm:$0xff]  ;;  %v497_v5 = vld [vmem:[%s1825_s3 + $0x3a0] sm:$0xff] }
  0x35   : > { %1009 = vmatpush3.msra.mxu0 %v422_v51  ;;  %1031 = vmatprep.subr.mxu1 %v476_v13  ;;  %v454_v49 = vld [vmem:[%s1825_s3 + $0x248] sm:$0xff]  ;;  %v469_v51 = vld [vmem:[%s1825_s3 + $0x2c0] sm:$0xff]  ;;  %v496_v9 = vld [vmem:[%s1825_s3 + $0x398] sm:$0xff] }
  0x36   : > { %1010 = vmatprep.subr.mxu0 %v437_v52  ;;  %v486_v50 = vld [vmem:[%s1825_s3 + $0x348] sm:$0xff]  ;;  %v501_v52 = vld [vmem:[%s1825_s3 + $0x3c0] sm:$0xff]  ;;  %v480_v11 = vld [vmem:[%s1825_s3 + $0x318] sm:$0xff] }
  0x37   : > { %1011 = vmatpush3.msra.mxu0 %v421_v53  ;;  %v453_v53 = vld [vmem:[%s1825_s3 + $0x240] sm:$0xff]  ;;  %v498_v1 = vld [vmem:[%s1825_s3 + $0x3a8] sm:$0xff]  ;;  %v495_v13 = vld [vmem:[%s1825_s3 + $0x390] sm:$0xff] }
  0x38   : > { %1012 = vmatprep.subr.mxu0 %v436_v54  ;;  %v485_v54 = vld [vmem:[%s1825_s3 + $0x340] sm:$0xff]  ;;  %v482_v3 = vld [vmem:[%s1825_s3 + $0x328] sm:$0xff] }
  0x39   : > { %1013 = vmatpush3.msra.mxu0 %v420_v55  ;;  %v468_v55 = vld [vmem:[%s1825_s3 + $0x2b8] sm:$0xff]  ;;  %v481_v7 = vld [vmem:[%s1825_s3 + $0x320] sm:$0xff] }
  0x3a   : > { %1014 = vmatprep.subr.mxu0 %v435_v56  ;;  %v500_v56 = vld [vmem:[%s1825_s3 + $0x3b8] sm:$0xff] }
  0x3b   : > { %1015 = vmatpush3.msra.mxu0 %v419_v57  ;;  %v452_v57 = vld [vmem:[%s1825_s3 + $0x238] sm:$0xff] }
  0x3c   : > { %1016 = vmatprep.subr.mxu0 %v434_v58  ;;  %v484_v58 = vld [vmem:[%s1825_s3 + $0x338] sm:$0xff] }
  0x3d   : > { %1017 = vmatpush3.msra.mxu0 %v418_v59  ;;  %v467_v59 = vld [vmem:[%s1825_s3 + $0x2b0] sm:$0xff] }
  0x3e   : > { %1018 = vmatprep.subr.mxu0 %v433_v60  ;;  %v499_v60 = vld [vmem:[%s1825_s3 + $0x3b0] sm:$0xff] }
  0x3f   : > { %1019 = vmatpush3.msra.mxu0 %v417_v61  ;;  %v451_v61 = vld [vmem:[%s1825_s3 + $0x230] sm:$0xff] }
  0x40   : > { %1020 = vmatprep.subr.mxu0 %v432_v62  ;;  %v483_v62 = vld [vmem:[%s1825_s3 + $0x330] sm:$0xff] }
  0x41   : > { %1021 = vmatpush3.msra.mxu0 %v416_v63  ;;  %v466_v63 = vld [vmem:[%s1825_s3 + $0x2a8] sm:$0xff] }
  0x42   : > { %1022 = vmatprep.subr.mxu0 %v431_v2  ;;  %v450_v2 = vld [vmem:[%s1825_s3 + $0x228] sm:$0xff] }
  0x43   : > { %1023 = vmatpush3.msra.mxu0 %v415_v4  ;;  %v465_v4 = vld [vmem:[%s1825_s3 + $0x2a0] sm:$0xff] }
  0x44   : > { %1024 = vmatprep.subr.mxu0 %v430_v6  ;;  %v449_v6 = vld [vmem:[%s1825_s3 + $0x220] sm:$0xff] }
  0x45   : > { %1025 = vmatpush3.msra.mxu0 %v414_v8  ;;  %v464_v8 = vld [vmem:[%s1825_s3 + $0x298] sm:$0xff] }
  0x46   : > { %1026 = vmatprep.subr.mxu0 %v429_v10  ;;  %v448_v10 = vld [vmem:[%s1825_s3 + $0x218] sm:$0xff] }
  0x47   : > { %1027 = vmatpush3.msra.mxu0 %v413_v12  ;;  %v463_v12 = vld [vmem:[%s1825_s3 + $0x290] sm:$0xff] }
  0x48   : > { %1066 = vmatprep.subr.mxu0 %v508_v14  ;;  %v447_v14 = vld [vmem:[%s1825_s3 + $0x210] sm:$0xff] }
  0x91   : > { %v289_v15 = vpop.permute.xlu0 %288 }
  0xe7   : > { %v361_v16 = vpop.f32.mrf.mxu0 }
  0xe8   : > { %v362_v17 = vadd.f32 %v361_v16, %v289_v15  ;;  %v479_v15 = vld [vmem:[%s1825_s3 + $0x310] sm:$0xff]  ;;  %v462_v16 = vld [vmem:[%s1825_s3 + $0x288] sm:$0xff] }
  0xe9   : > { %v1124_v18 = vpop.f32.mrf.mxu0 }
  0xea   : > { %v1562_v19 = vmax.f32 %v362_v17, 0.0  ;;  %v494_v17 = vld [vmem:[%s1825_s3 + $0x388] sm:$0xff] }
  0xeb   : > { %v446_v18 = vld [vmem:[%s1825_s3 + $0x208] sm:$0xff] }
  0xec   : > { %v367_v20 = vrot.slane %v1562_v19, 1  ;;  %v371_v21 = vrot.slane %v1562_v19, 3  ;;  %v369_v22 = vrot.slane %v1562_v19, 2  ;;  %v375_v26 = vrot.slane %v1562_v19, 5 }
  0xed   : > { %v379_v28 = vrot.slane %v1562_v19, 7 }
  0xee   : > { %574 = vmatprep.mubr.f32.mxu1 %v367_v20  ;;  %644 = vmatprep.mubr.f32.mxu0 %v371_v21  ;;  %v478_v20 = vld [vmem:[%s1825_s3 + $0x308] sm:$0xff]  ;;  %v461_v21 = vld [vmem:[%s1825_s3 + $0x280] sm:$0xff] }
  0xef   : > { %575 = vmatmul.mubr.f32.vlgmr.msra.gmra.mxu1 %v1562_v19  ;;  %645 = vmatmul.mubr.f32.vlgmr.msra.gmra.mxu0 %v369_v22  ;;  %v493_v22 = vld [vmem:[%s1825_s3 + $0x380] sm:$0xff] }
  0xf0   : > { %1032 = vmatpush3.msra.mxu1 %v460_v23  ;;  %1067 = vmatpush3.msra.mxu0 %v492_v24  ;;  %v445_v23 = vld [vmem:[%s1825_s3 + $0x200] sm:$0xff] }
  0xf1   : > { %1033 = vmatprep.subr.mxu1 %v475_v25  ;;  %714 = vmatprep.mubr.f32.mxu1 %v375_v26  ;;  %v477_v24 = vld [vmem:[%s1825_s3 + $0x300] sm:$0xff]  ;;  %v373_v25 = vrot.slane %v1562_v19, 4  ;;  %v377_v26 = vrot.slane %v1562_v19, 6  ;;  %v793_v19 = vld [vmem:[%s1827_s5 + $0x10] sm:$0xff] }
  0xf2   : > { %1068 = vmatprep.subr.mxu0 %v507_v27  ;;  %784 = vmatprep.mubr.f32.mxu0 %v379_v28  ;;  %v794_v27 = vld [vmem:[%s1827_s5 + $0x18] sm:$0xff]  ;;  %v792_v28 = vld [vmem:[%s1827_s5 + $0x8] sm:$0xff] }
  0xf3   : > { %1034 = vmatpush3.msra.mxu1 %v459_v29  ;;  %1069 = vmatpush3.msra.mxu0 %v491_v30  ;;  %v791_v29 = vld [vmem:[%s1827_s5] sm:$0xff] }
  0xf4   : > { %1035 = vmatprep.subr.mxu1 %v474_v31  ;;  %1070 = vmatprep.subr.mxu0 %v506_v32 }
  0xf5   : > { %1036 = vmatpush3.msra.mxu1 %v458_v33  ;;  %1071 = vmatpush3.msra.mxu0 %v490_v34  ;;  %v509_v34 = vld [vmem:[%s1826_s4] sm:$0x1] }
  0xf6   : > { %1037 = vmatprep.subr.mxu1 %v473_v35  ;;  %1072 = vmatprep.subr.mxu0 %v505_v36 }
  0xf7   : > { %1038 = vmatpush3.msra.mxu1 %v457_v37  ;;  %1073 = vmatpush3.msra.mxu0 %v489_v38 }
  0xf8   : > { %1039 = vmatprep.subr.mxu1 %v472_v39  ;;  %1074 = vmatprep.subr.mxu0 %v504_v40 }
  0xf9   : > { %1040 = vmatpush3.msra.mxu1 %v456_v41  ;;  %1075 = vmatpush3.msra.mxu0 %v488_v42 }
  0xfa   : > { %1041 = vmatprep.subr.mxu1 %v471_v43  ;;  %1076 = vmatprep.subr.mxu0 %v503_v44 }
  0xfb   : > { %1042 = vmatpush3.msra.mxu1 %v455_v45  ;;  %1077 = vmatpush3.msra.mxu0 %v487_v46 }
  0xfc   : > { %1043 = vmatprep.subr.mxu1 %v470_v47  ;;  %1078 = vmatprep.subr.mxu0 %v502_v48  ;;  %v795_v47 = vld [vmem:[%s1828_s6] sm:$0x1] }
  0xfd   : > { %1044 = vmatpush3.msra.mxu1 %v454_v49  ;;  %1079 = vmatpush3.msra.mxu0 %v486_v50 }
  0xfe   : > { %1045 = vmatprep.subr.mxu1 %v469_v51  ;;  %1080 = vmatprep.subr.mxu0 %v501_v52 }
  0xff   : > { %1046 = vmatpush3.msra.mxu1 %v453_v53  ;;  %1081 = vmatpush3.msra.mxu0 %v485_v54 }
 0x100   : > { %1047 = vmatprep.subr.mxu1 %v468_v55  ;;  %1082 = vmatprep.subr.mxu0 %v500_v56 }
 0x101   : > { %1048 = vmatpush3.msra.mxu1 %v452_v57  ;;  %1083 = vmatpush3.msra.mxu0 %v484_v58 }
 0x102   : > { %1049 = vmatprep.subr.mxu1 %v467_v59  ;;  %1084 = vmatprep.subr.mxu0 %v499_v60 }
 0x103   : > { %1050 = vmatpush3.msra.mxu1 %v451_v61  ;;  %1085 = vmatpush3.msra.mxu0 %v483_v62 }
 0x104   : > { %1051 = vmatprep.subr.mxu1 %v466_v63  ;;  %1086 = vmatprep.subr.mxu0 %v498_v1 }
 0x105   : > { %1052 = vmatpush3.msra.mxu1 %v450_v2  ;;  %1087 = vmatpush3.msra.mxu0 %v482_v3 }
 0x106   : > { %1053 = vmatprep.subr.mxu1 %v465_v4  ;;  %1088 = vmatprep.subr.mxu0 %v497_v5 }
 0x107   : > { %1054 = vmatpush3.msra.mxu1 %v449_v6  ;;  %1089 = vmatpush3.msra.mxu0 %v481_v7 }
 0x108   : > { %1055 = vmatprep.subr.mxu1 %v464_v8  ;;  %1090 = vmatprep.subr.mxu0 %v496_v9 }
 0x109   : > { %1056 = vmatpush3.msra.mxu1 %v448_v10  ;;  %1091 = vmatpush3.msra.mxu0 %v480_v11 }
 0x10a   : > { %1057 = vmatprep.subr.mxu1 %v463_v12  ;;  %1092 = vmatprep.subr.mxu0 %v495_v13 }
 0x10b   : > { %1058 = vmatpush3.msra.mxu1 %v447_v14  ;;  %1093 = vmatpush3.msra.mxu0 %v479_v15 }
 0x10c   : > { %1059 = vmatprep.subr.mxu1 %v462_v16  ;;  %1094 = vmatprep.subr.mxu0 %v494_v17 }
 0x10d   : > { %1060 = vmatpush3.msra.mxu1 %v446_v18  ;;  %1095 = vmatpush3.msra.mxu0 %v478_v20 }
 0x10e   : > { %1061 = vmatprep.subr.mxu1 %v461_v21  ;;  %1096 = vmatprep.subr.mxu0 %v493_v22 }
 0x10f   : > { %1062 = vmatpush3.msra.mxu1 %v445_v23  ;;  %1097 = vmatpush3.msra.mxu0 %v477_v24 }
 0x110   : > { %715 = vmatmul.mubr.f32.vlgmr.msra.gmra.mxu1 %v373_v25  ;;  %785 = vmatmul.mubr.f32.vlgmr.msra.gmra.mxu0 %v377_v26 }
 0x111   : > { %1125 = vmatprep.subr.mxu1 %v1241_v0  ;;  %1133 = vmatprep.mubr.msk.f32.mxu1 %vm1242_vm0, %v1241_v0 }
 0x112   : > { %1126 = vmatpush3.msra.mxu1 %v794_v27 }
 0x113   : > { %1127 = vmatprep.subr.mxu1 %v1241_v0 }
 0x114   : > { %1128 = vmatpush3.msra.mxu1 %v793_v19 }
 0x115   : > { %1129 = vmatprep.subr.mxu1 %v1241_v0 }
 0x116   : > { %1130 = vmatpush3.msra.mxu1 %v792_v28 }
 0x117   : > { %1131 = vmatprep.subr.mxu1 %v1241_v0 }
 0x118   : > { %1132 = vmatpush3.msra.mxu1 %v791_v29 }
 0x1af   : > { %v993_v30 = vpop.f32.mrf.mxu1  ;;  %v1028_v32 = vpop.f32.mrf.mxu0 }
 0x1b1   : > { %v994_v31 = vpop.f32.mrf.mxu1  ;;  %v1029_v35 = vpop.f32.mrf.mxu0 }
 0x1b2   : > { %v995_v33 = vadd.f32 %v994_v31, %v993_v30  ;;  %v1030_v0 = vadd.f32 %v1029_v35, %v1028_v32 }
 0x1b4   : > { %v577_v36 = vadd.f32 %v995_v33, %v509_v34 }
 0x1b6   : > { %v647_v41 = vadd.f32 %v1030_v0, %v577_v36 }
 0x1d0   : > { %v1063_v37 = vpop.f32.mrf.mxu1  ;;  %v1098_v38 = vpop.f32.mrf.mxu0 }
 0x1d2   : > { %v1064_v39 = vpop.f32.mrf.mxu1  ;;  %v1099_v40 = vpop.f32.mrf.mxu0 }
 0x1d3   : > { %v1065_v42 = vadd.f32 %v1064_v39, %v1063_v37  ;;  %v1100_v44 = vadd.f32 %v1099_v40, %v1098_v38 }
 0x1d5   : > { %v717_v43 = vadd.f32 %v1065_v42, %v647_v41 }
 0x1d7   : > { %v787_v45 = vadd.f32 %v1100_v44, %v717_v43 }
 0x1d9   : > { %v790_v46 = vmax.f32 %v787_v45, 0.0 }
 0x1db   : > { %1134 = vmatmul.mubr.msk.f32.vlgmr.msra.gmra.mxu1 %vm796_vm2, %v790_v46 }
 0x29b   : > { %v866_v48 = vpop.f32.mrf.mxu1 }
 0x29c   : > { %v867_v49 = vadd.f32 %v866_v48, %v795_v47 }
 0x29d   : > { %v1135_v50 = vpop.f32.mrf.mxu1 }
 0x29e   : > { %871 = vst.msk [vmem:[%s270_s13] sm:$0x1] %vm870_vm3, %v867_v49 }
 0x29f   : > { %1192 = shalt.err (!%p1189_p3)
}
 0x2a0   : > { %s1193_s23 = scalar_lea.hbm %s1787_s17, 16  ;;  %s1197_s8 = scalar_lea.hbm %s1829_s7, 32 }
 0x2a1   : > { %p1194_p4 = scmp.ne.s32.totalorder %s1787_s17, %s1193_s23  ;;  %p1198_p9 = scmp.lt.s32.totalorder %s1787_s17, %s1829_s7 }
 0x2a2   : > { %p1199_p10 = scmp.lt.s32.totalorder %s1197_s8, %s1193_s23 }
 0x2a3   : > { %p1195_p7 = pnand %p1194_p4, %p1323_p5 }
 0x2a4   : > { %p1200_p11 = por %p1199_p10, %p1198_p9 }
 0x2a5   : > { %p1196_p8 = pneg %p1195_p7 }
 0x2a7   : > { %p1201_p12 = pnand %p1200_p11, %p1196_p8 }
 0x2a9   : > { %1204 = shalt.err (!%p1201_p12)
}
 0x2aa   : > { %1136 = dma.vmem_to_hbm [thread:$0]  (%p1323_p5), %s886_s14, 16, %s1787_s17, %s873_s19  }
 0x2ab PF: > { %p1142_p13 = scmp.ge.s32.totalorder %s1239_s27, 2  ;;  %s897_s15 = sand.u32 1, %s1227_s24  }
 0x2ac   : > { %s898_s16 = scalar_lea.sflag [#allocation3], %s897_s15 }
 0x2ad   : > { %p1139_p0 = pnand %p1142_p13, %p1327_p6 }
 0x2af   : > { %p1140_p1 = pneg %p1139_p0 }
 0x2b1   : > { %1222 = dma.done.wait (%p1140_p1), %s898_s16, 16  }
 0x2b2   : > { %1224 = vsyncadd (%p1140_p1), %s898_s16, 4294967280  ;;  %p17_p2 = scmp.ge.s32.totalorder %s1310_s30, 4   ;;  %s1832_s24 = smov %s1231_s25 }
 0x2b3   : > { %s1833_s25 = smov %s1235_s26  ;;  %s1834_s26 = smov %s1321_s10 }
 0x2b4   : > { %s1835_s27 = smov %s1310_s30  ;;  %19 = sbr.rel (!%p17_p2) target bundleno = 3 (0x3), region = 83 }
 0x2b9   :  { %902 = vsyncpa [#allocation3], 1 }
 0x2ba   :  { %904 = vsyncpa [#allocation3 + $0x1], 1 }

</bundles_post_ra>
